<compile_context>
chip_gen: v6e
topology: v6e:2x2x1
jax: 0.10.0
libtpu: 0.0.40
codegen_flags: <defaults>
</compile_context>

<pallas_src>
import jax
import jax.numpy as jnp
from jax.experimental import pallas as pl
from jax.experimental.pallas import tpu as pltpu


def _identity_dma_kernel(x_hbm_ref, o_hbm_ref):
    """Single HBM->HBM async copy of the whole array (no VMEM staging)."""

    def body(sem):
        cp = pltpu.make_async_copy(x_hbm_ref, o_hbm_ref, sem)
        cp.start()
        cp.wait()

    pl.run_scoped(body, pltpu.SemaphoreType.DMA)


def _pallas_identity_copy(x: jax.Array) -> jax.Array:
    """Identity that materializes a new buffer via one HBM->HBM DMA."""
    nbytes = x.size * jnp.dtype(x.dtype).itemsize
    return pl.pallas_call(
        _identity_dma_kernel,
        out_shape=jax.ShapeDtypeStruct(x.shape, x.dtype),
        in_specs=[pl.BlockSpec(memory_space=pl.ANY)],
        out_specs=pl.BlockSpec(memory_space=pl.ANY),
        cost_estimate=pl.CostEstimate(
            flops=0,
            transcendentals=0,
            bytes_accessed=2 * nbytes,
        ),
    )(x)


def print_layer(name: str, x: jax.Array, *, force_copy: bool = False) -> jax.Array:
    """Forward pass matching PrintLayer.forward: print(name, size); return x.

    Default (hot) path moves zero bytes — an identity layer should not copy.
    `force_copy=True` routes through the Pallas HBM->HBM DMA kernel when the
    caller explicitly needs an independent output buffer.
    """
    # TODO(synk): under jax.jit this print fires once per trace, not per call.
    print(name, tuple(x.shape))

    if not force_copy or x.size == 0:
        return x
    return _pallas_identity_copy(x)


if __name__ == "__main__":
    key = jax.random.PRNGKey(0)
    # Small NCHW input consistent with a conv-net intermediate.
    x = jax.random.normal(key, (2, 4, 16, 16), dtype=jnp.float32)

    # Zero-copy default path (the optimal identity).
    y = print_layer("print_layer_demo", x)
    y = jax.block_until_ready(y)
    assert y.shape == x.shape and y.dtype == x.dtype
    assert bool(jnp.all(y == x))

    # Exercise the Pallas HBM->HBM DMA kernel once (fresh-buffer path).
    y_copy = print_layer("print_layer_demo_copy", x, force_copy=True)
    y_copy = jax.block_until_ready(y_copy)
    assert y_copy.shape == x.shape and y_copy.dtype == x.dtype
    assert bool(jnp.all(y_copy == x))

    print("KERNEL_OK")
</pallas_src>

<mosaic_0001>
module attributes {stable_mosaic.version = 11 : i64} {
  func.func @_identity_dma_kernel(%arg0: memref<2x4x16x16xf32, #tpu.memory_space<any>>, %arg1: memref<2x4x16x16xf32, #tpu.memory_space<any>>) attributes {dimension_semantics = [], scalar_prefetch = 0 : i64, scratch_operands = 0 : i64, tpu.core_type = #tpu.core_type<tc>} {
    "tpu.region"() ({
      %0 = tpu.sem_alloc : memref<!tpu.dma_semaphore, #tpu.memory_space<semaphore_mem>>
      tpu.enqueue_dma source(%arg0 : memref<2x4x16x16xf32, #tpu.memory_space<any>>) target(%arg1 : memref<2x4x16x16xf32, #tpu.memory_space<any>>) target_semaphore(%0 : memref<!tpu.dma_semaphore, #tpu.memory_space<semaphore_mem>>)
      tpu.wait_dma2 semaphore(%0 : memref<!tpu.dma_semaphore, #tpu.memory_space<semaphore_mem>>) src(%arg0 : memref<2x4x16x16xf32, #tpu.memory_space<any>>) dst(%arg1 : memref<2x4x16x16xf32, #tpu.memory_space<any>>)
      tpu.yield
    }) : () -> ()
    return
  }
}

</mosaic_0001>

<bundles_post_ra>
// kernel: tpu_custom_call.1
= control target key start
LH: loop header
LB: loop body
LE: loop exit
PB: predicated region body
PF: predicated region fallthrough
CT: control target
= control target key end

     0   :  { %s23_s6 = smov [#allocation2]   ;;  %s24_s7 = smov 131072   ;;  %s42_s0 = inlined_call_operand.hbm [shape: f32[2,4,16,16], index: 0, kind: input, shape index: {}]   ;;  %s43_s1 = inlined_call_operand.hbm [shape: f32[2,4,16,16], index: 1, kind: output, shape index: {}]  }
   0x1   :  { %s25_s8 = smov 0  }
   0x2   :  { %12 = dma.general %s42_s0, 2048, %s43_s1, %s23_s6, %s24_s7, [#allocation4], %s25_s8, 0  }
   0x3   :  { %21 = dma.done.wait [#allocation2], 2048 }
   0x4   :  { %22 = vsyncadd [#allocation2], 4294965248 }

</bundles_post_ra>
